<compile_context>
chip_gen: v6e
topology: v6e:2x2x1
jax: 0.10.0
libtpu: 0.0.40
codegen_flags: <defaults>
</compile_context>

<pallas_src>
import functools
import math

import jax
import jax.numpy as jnp
from jax import lax
from jax.experimental import pallas as pl
from jax.experimental.pallas import tpu as pltpu


# ---------------------------------------------------------------------------
# Tiling helper
# ---------------------------------------------------------------------------
def _pick_tile(dim, target, align):
    """Largest multiple of `align` that divides `dim` and is <= target; else the full dim.

    Guarantees the resulting block dim is either a multiple of the required (8,128)
    alignment or equal to the full array dim (Pallas TPU block-shape constraint).
    """
    if dim <= target:
        return dim
    t = (target // align) * align
    while t >= align:
        if dim % t == 0:
            return t
        t -= align
    return dim


# ---------------------------------------------------------------------------
# Tiled Linear:  out = act(x @ w + b),  w stored as (K, N) (pre-transposed)
# ---------------------------------------------------------------------------
def _linear_kernel(x_ref, w_ref, b_ref, o_ref, acc_ref, *, activation):
    k = pl.program_id(2)

    @pl.when(k == 0)
    def _():
        acc_ref[...] = jnp.zeros_like(acc_ref)

    acc_ref[...] += jnp.dot(
        x_ref[...], w_ref[...], preferred_element_type=jnp.float32
    )

    @pl.when(k == pl.num_programs(2) - 1)
    def _():
        out = acc_ref[...] + b_ref[...]  # (1, tn) broadcasts over rows
        if activation == "relu":
            out = jnp.maximum(out, 0.0)
        o_ref[...] = out.astype(o_ref.dtype)


def linear(x, w, b, activation=None, tm=256, tn=256, tk=512):
    """x:(M,K) @ w:(K,N) + b:(N,) with f32 accumulation.

    Weights must already be in (in_features, out_features) layout -- no .T in the
    wrapper.  f32 operands keep the module's numerics; feed bf16 x/w here for the
    v6e/v7x MXU fast path if the surrounding model tolerates it.
    """
    M, K = x.shape
    K2, N = w.shape
    assert K == K2, (x.shape, w.shape)
    tm = _pick_tile(M, tm, 8)
    tn = _pick_tile(N, tn, 128)
    tk = _pick_tile(K, tk, 128)
    grid = (M // tm, N // tn, K // tk)
    kernel = functools.partial(_linear_kernel, activation=activation)
    return pl.pallas_call(
        kernel,
        out_shape=jax.ShapeDtypeStruct((M, N), x.dtype),
        grid_spec=pltpu.PrefetchScalarGridSpec(
            num_scalar_prefetch=0,
            grid=grid,
            in_specs=[
                pl.BlockSpec((tm, tk), lambda i, j, k: (i, k)),
                pl.BlockSpec((tk, tn), lambda i, j, k: (k, j)),
                pl.BlockSpec((1, tn), lambda i, j, k: (0, j)),
            ],
            out_specs=pl.BlockSpec((tm, tn), lambda i, j, k: (i, j)),
            scratch_shapes=[pltpu.VMEM((tm, tn), jnp.float32)],
        ),
        compiler_params=pltpu.CompilerParams(
            dimension_semantics=("parallel", "parallel", "arbitrary"),
        ),
    )(x, w, b.reshape(1, N))


# ---------------------------------------------------------------------------
# Fused PositionWiseFFN:  relu(x @ W1 + b1) @ W2 + b2 in one kernel.
# Grid = (row tiles, hidden tiles); hidden axis is the reduction of the 2nd matmul,
# so the (M, 4E) hidden activation lives only in vregs/VMEM and never hits HBM.
# ---------------------------------------------------------------------------
def _ffn_kernel(x_ref, w1_ref, b1_ref, w2_ref, b2_ref, o_ref, acc_ref):
    j = pl.program_id(1)

    @pl.when(j == 0)
    def _():
        acc_ref[...] = jnp.zeros_like(acc_ref)

    h = jnp.dot(x_ref[...], w1_ref[...], preferred_element_type=jnp.float32)
    h = jnp.maximum(h + b1_ref[...], 0.0)
    acc_ref[...] += jnp.dot(
        h.astype(w2_ref.dtype), w2_ref[...], preferred_element_type=jnp.float32
    )

    @pl.when(j == pl.num_programs(1) - 1)
    def _():
        o_ref[...] = (acc_ref[...] + b2_ref[...]).astype(o_ref.dtype)


def position_wise_ffn(x_nle, p, tm=256, th=256):
    """x_nle: (N, L, E) -> (N, L, E).  Weights pre-transposed: fc1_w (E,4E), fc2_w (4E,E)."""
    N, L, E = x_nle.shape
    M = N * L
    H = p["fc1_w"].shape[1]
    x2d = x_nle.reshape(M, E)
    tm = _pick_tile(M, tm, 8)
    th = _pick_tile(H, th, 128)
    # TODO(synk): for very large E, additionally tile the E axis of x/W1/acc so the
    # per-row-tile working set stays inside v7x's 64 MiB VMEM budget.
    out = pl.pallas_call(
        _ffn_kernel,
        out_shape=jax.ShapeDtypeStruct((M, E), x2d.dtype),
        grid_spec=pltpu.PrefetchScalarGridSpec(
            num_scalar_prefetch=0,
            grid=(M // tm, H // th),
            in_specs=[
                pl.BlockSpec((tm, E), lambda i, j: (i, 0)),   # x row tile
                pl.BlockSpec((E, th), lambda i, j: (0, j)),   # W1 hidden tile
                pl.BlockSpec((1, th), lambda i, j: (0, j)),   # b1 hidden tile
                pl.BlockSpec((th, E), lambda i, j: (j, 0)),   # W2 hidden tile
                pl.BlockSpec((1, E), lambda i, j: (0, 0)),    # b2
            ],
            out_specs=pl.BlockSpec((tm, E), lambda i, j: (i, 0)),
            scratch_shapes=[pltpu.VMEM((tm, E), jnp.float32)],
        ),
        compiler_params=pltpu.CompilerParams(
            dimension_semantics=("parallel", "arbitrary"),
        ),
    )(x2d, p["fc1_w"], p["fc1_b"].reshape(1, H), p["fc2_w"], p["fc2_b"].reshape(1, E))
    return out.reshape(N, L, E)


# ---------------------------------------------------------------------------
# Fused multi-head self-attention core.
# One grid step = one batch element: reads a lane-dense (L, 3E) qkv block, loops heads
# with static slices, writes a single dense (L, E) block with all heads packed
# (PyTorch head-concat layout) so the out-projection is a plain tiled linear.
# ---------------------------------------------------------------------------
def _mha_kernel(qkv_ref, o_ref, *, num_head, head_dim, scale):
    E = num_head * head_dim
    qkv = qkv_ref[0]  # (L, 3E)
    outs = []
    for h in range(num_head):  # static unroll over heads
        lo = h * head_dim
        qh = qkv[:, lo:lo + head_dim]               # (L, hd)
        kh = qkv[:, E + lo:E + lo + head_dim]       # (L, hd)
        vh = qkv[:, 2 * E + lo:2 * E + lo + head_dim]
        # QK^T as a last-dim contraction (no in-kernel transpose of K).
        s = lax.dot_general(
            qh, kh, (((1,), (1,)), ((), ())), preferred_element_type=jnp.float32
        ) * scale                                    # (L, L)
        m = jnp.max(s, axis=-1, keepdims=True)
        p = jnp.exp(s - m)
        denom = jnp.sum(p, axis=-1, keepdims=True)
        attn = p * pl.reciprocal(denom, approx=True)  # EUP reciprocal, off the VALU path
        oh = jnp.dot(attn.astype(vh.dtype), vh, preferred_element_type=jnp.float32)
        outs.append(oh)
    # Single lane-dense store of all heads.
    o_ref[0] = jnp.concatenate(outs, axis=-1).astype(o_ref.dtype)
    # TODO(synk): for long sequences (L >~ 2k) replace the full (L,L) score matrix with
    # flash-style KV tiling (running max/denominator in VMEM scratch, KV grid axis
    # marked "arbitrary") so VMEM stays bounded on v7x's 64 MiB.


def multihead_attention(x_nle, p, num_head):
    """nn.MultiheadAttention(dim, num_head) self-attention (eval), batch-major input."""
    N, L, E = x_nle.shape
    assert E % num_head == 0
    hd = E // num_head

    # in-projection (tiled linear, weights pre-transposed to (E, 3E))
    qkv = linear(x_nle.reshape(N * L, E), p["in_proj_w"], p["in_proj_b"])
    qkv = qkv.reshape(N, L, 3 * E)  # contiguous reshape, no transpose

    attn_out = pl.pallas_call(
        functools.partial(
            _mha_kernel, num_head=num_head, head_dim=hd, scale=1.0 / math.sqrt(hd)
        ),
        out_shape=jax.ShapeDtypeStruct((N, L, E), x_nle.dtype),
        grid=(N,),
        in_specs=[pl.BlockSpec((1, L, 3 * E), lambda n: (n, 0, 0))],
        out_specs=pl.BlockSpec((1, L, E), lambda n: (n, 0, 0)),
        compiler_params=pltpu.CompilerParams(dimension_semantics=("parallel",)),
    )(qkv)

    # out-projection (tiled linear on the already head-packed (N*L, E) tensor)
    out = linear(attn_out.reshape(N * L, E), p["out_proj_w"], p["out_proj_b"])
    return out.reshape(N, L, E)


# ---------------------------------------------------------------------------
# Encoder: runs the whole stack batch-major; single transpose in / out.
# ---------------------------------------------------------------------------
def transformer_encoder(src, layer_params, num_head):
    # src: (L, N, E) -- PyTorch batch_first=False convention.
    x = jnp.transpose(src, (1, 0, 2))  # (N, L, E), once for the whole stack
    for p in layer_params:
        x = multihead_attention(x, p, num_head)  # attn(src, src, src)[0]
        x = position_wise_ffn(x, p)              # pffn(out)  (no residual/LN, per module)
    return jnp.transpose(x, (1, 0, 2))           # back to (L, N, E)


# ---------------------------------------------------------------------------
# Deterministic parameter init.
# NOTE: weights are stored in (in_features, out_features) layout, i.e. the transpose of
# PyTorch's nn.Linear / in_proj_weight storage.  When porting a real checkpoint,
# transpose once at load time (not per forward pass).
# ---------------------------------------------------------------------------
def init_params(key, dim, num_layers):
    hidden = 4 * dim
    params = []
    for _ in range(num_layers):
        keys = jax.random.split(key, 9)
        key = keys[0]
        params.append(
            {
                "in_proj_w": 0.02 * jax.random.normal(keys[1], (dim, 3 * dim), jnp.float32),
                "in_proj_b": 0.02 * jax.random.normal(keys[2], (3 * dim,), jnp.float32),
                "out_proj_w": 0.02 * jax.random.normal(keys[3], (dim, dim), jnp.float32),
                "out_proj_b": 0.02 * jax.random.normal(keys[4], (dim,), jnp.float32),
                "fc1_w": 0.02 * jax.random.normal(keys[5], (dim, hidden), jnp.float32),
                "fc1_b": 0.02 * jax.random.normal(keys[6], (hidden,), jnp.float32),
                "fc2_w": 0.02 * jax.random.normal(keys[7], (hidden, dim), jnp.float32),
                "fc2_b": 0.02 * jax.random.normal(keys[8], (dim,), jnp.float32),
            }
        )
    return params


if __name__ == "__main__":
    seq_len, batch, dim, num_head, num_layers = 8, 2, 32, 4, 2

    key = jax.random.PRNGKey(0)
    k_src, k_params = jax.random.split(key)
    src = jax.random.normal(k_src, (seq_len, batch, dim), jnp.float32)
    layer_params = init_params(k_params, dim, num_layers)

    fwd = jax.jit(transformer_encoder, static_argnames=("num_head",))
    out = fwd(src, layer_params, num_head=num_head)
    out = jax.block_until_ready(out)
    assert out.shape == (seq_len, batch, dim), out.shape
    print("KERNEL_OK")
</pallas_src>

<mosaic_0001>
module attributes {stable_mosaic.version = 11 : i64} {
  func.func @_linear_kernel(%arg0: i32, %arg1: i32, %arg2: i32, %arg3: memref<16x32xf32, #tpu.memory_space<vmem>>, %arg4: memref<32x32xf32, #tpu.memory_space<vmem>>, %arg5: memref<1x32xf32, #tpu.memory_space<vmem>>, %arg6: memref<16x32xf32, #tpu.memory_space<vmem>>, %arg7: memref<16x32xf32, #tpu.memory_space<vmem>>) attributes {dimension_semantics = [#tpu.dimension_semantics<parallel>, #tpu.dimension_semantics<parallel>, #tpu.dimension_semantics<arbitrary>], iteration_bounds = array<i64: 1, 1, 1>, scalar_prefetch = 0 : i64, scratch_operands = 1 : i64, tpu.core_type = #tpu.core_type<tc>, window_params = [{transform_indices = @transform_0, window_bounds = array<i64: 16, 32>}, {transform_indices = @transform_1, window_bounds = array<i64: 32, 32>}, {transform_indices = @transform_2, window_bounds = array<i64: 1, 32>}, {transform_indices = @transform_3, window_bounds = array<i64: 16, 32>}]} {
    %c0_i32 = arith.constant 0 : i32
    %0 = arith.cmpi eq, %arg2, %c0_i32 : i32
    %1 = arith.extui %0 : i1 to i32
    %c0_i32_0 = arith.constant 0 : i32
    %2 = arith.cmpi ne, %1, %c0_i32_0 : i32
    scf.if %2 {
      %cst_10 = arith.constant 0.000000e+00 : f32
      %12 = vector.broadcast %cst_10 : f32 to vector<16x32xf32>
      %c0_11 = arith.constant 0 : index
      %c0_12 = arith.constant 0 : index
      %13 = vector.load %arg7[%c0_11, %c0_12] : memref<16x32xf32, #tpu.memory_space<vmem>>, vector<16x32xf32>
      tpu.vector_store %arg7[%c0_11, %c0_12], %12 {strides = array<i32>} : memref<16x32xf32, #tpu.memory_space<vmem>>, vector<16x32xf32>,
    } else {
    }
    %c0 = arith.constant 0 : index
    %c0_1 = arith.constant 0 : index
    %3 = vector.load %arg7[%c0, %c0_1] : memref<16x32xf32, #tpu.memory_space<vmem>>, vector<16x32xf32>
    %c0_2 = arith.constant 0 : index
    %c0_3 = arith.constant 0 : index
    %4 = vector.load %arg3[%c0_2, %c0_3] : memref<16x32xf32, #tpu.memory_space<vmem>>, vector<16x32xf32>
    %c0_4 = arith.constant 0 : index
    %c0_5 = arith.constant 0 : index
    %5 = vector.load %arg4[%c0_4, %c0_5] : memref<32x32xf32, #tpu.memory_space<vmem>>, vector<32x32xf32>
    %cst = arith.constant dense<0.000000e+00> : vector<16x32xf32>
    %6 = tpu.matmul %4, %5, %cst {dimension_numbers = #tpu.dot_dimension_numbers<[1], [0], [0], [1], [0, 0, 1, 1], [], []>} : vector<16x32xf32>, vector<32x32xf32>, vector<16x32xf32> -> vector<16x32xf32>
    %7 = arith.addf %3, %6 : vector<16x32xf32>
    %c0_6 = arith.constant 0 : index
    %c0_7 = arith.constant 0 : index
    %8 = vector.load %arg7[%c0_6, %c0_7] : memref<16x32xf32, #tpu.memory_space<vmem>>, vector<16x32xf32>
    tpu.vector_store %arg7[%c0_6, %c0_7], %7 {strides = array<i32>} : memref<16x32xf32, #tpu.memory_space<vmem>>, vector<16x32xf32>,
    %c0_i32_8 = arith.constant 0 : i32
    %9 = arith.cmpi eq, %arg2, %c0_i32_8 : i32
    %10 = arith.extui %9 : i1 to i32
    %c0_i32_9 = arith.constant 0 : i32
    %11 = arith.cmpi ne, %10, %c0_i32_9 : i32
    scf.if %11 {
      %c0_10 = arith.constant 0 : index
      %c0_11 = arith.constant 0 : index
      %12 = vector.load %arg7[%c0_10, %c0_11] : memref<16x32xf32, #tpu.memory_space<vmem>>, vector<16x32xf32>
      %c0_12 = arith.constant 0 : index
      %c0_13 = arith.constant 0 : index
      %13 = vector.load %arg5[%c0_12, %c0_13] : memref<1x32xf32, #tpu.memory_space<vmem>>, vector<1x32xf32>
      %14 = vector.broadcast %13 : vector<1x32xf32> to vector<16x32xf32>
      %15 = arith.addf %12, %14 : vector<16x32xf32>
      %c0_14 = arith.constant 0 : index
      %c0_15 = arith.constant 0 : index
      %16 = vector.load %arg6[%c0_14, %c0_15] : memref<16x32xf32, #tpu.memory_space<vmem>>, vector<16x32xf32>
      tpu.vector_store %arg6[%c0_14, %c0_15], %15 {strides = array<i32>} : memref<16x32xf32, #tpu.memory_space<vmem>>, vector<16x32xf32>,
    } else {
    }
    return
  }
  func.func @transform_0(%arg0: i32, %arg1: i32, %arg2: i32) -> (i32, i32) {
    %c0_i32 = arith.constant 0 : i32
    return %arg0, %arg2 : i32, i32
  }
  func.func @transform_1(%arg0: i32, %arg1: i32, %arg2: i32) -> (i32, i32) {
    %c0_i32 = arith.constant 0 : i32
    return %arg2, %arg1 : i32, i32
  }
  func.func @transform_2(%arg0: i32, %arg1: i32, %arg2: i32) -> (i32, i32) {
    %c0_i32 = arith.constant 0 : i32
    %c0_i32_0 = arith.constant 0 : i32
    return %c0_i32, %arg1 : i32, i32
  }
  func.func @transform_3(%arg0: i32, %arg1: i32, %arg2: i32) -> (i32, i32) {
    %c0_i32 = arith.constant 0 : i32
    return %arg0, %arg1 : i32, i32
  }
}

module attributes {stable_mosaic.version = 11 : i64} {
  func.func @_mha_kernel(%arg0: i32, %arg1: memref<1x8x96xf32, #tpu.memory_space<vmem>>, %arg2: memref<1x8x32xf32, #tpu.memory_space<vmem>>) attributes {dimension_semantics = [#tpu.dimension_semantics<parallel>], iteration_bounds = array<i64: 2>, scalar_prefetch = 0 : i64, scratch_operands = 0 : i64, tpu.core_type = #tpu.core_type<tc>, window_params = [{transform_indices = @transform_0, window_bounds = array<i64: 1, 8, 96>}, {transform_indices = @transform_1, window_bounds = array<i64: 1, 8, 32>}]} {
    %c0 = arith.constant 0 : index
    %c0_0 = arith.constant 0 : index
    %c0_1 = arith.constant 0 : index
    %0 = vector.load %arg1[%c0, %c0_0, %c0_1] : memref<1x8x96xf32, #tpu.memory_space<vmem>>, vector<1x8x96xf32>
    %1 = vector.shape_cast %0 : vector<1x8x96xf32> to vector<8x96xf32>
    %2 = vector.extract_strided_slice %1 {offsets = [0, 0], sizes = [8, 8], strides = [1, 1]} : vector<8x96xf32> to vector<8x8xf32>
    %3 = vector.extract_strided_slice %1 {offsets = [0, 32], sizes = [8, 8], strides = [1, 1]} : vector<8x96xf32> to vector<8x8xf32>
    %4 = vector.extract_strided_slice %1 {offsets = [0, 64], sizes = [8, 8], strides = [1, 1]} : vector<8x96xf32> to vector<8x8xf32>
    %cst = arith.constant dense<0.000000e+00> : vector<8x8xf32>
    %5 = tpu.matmul %2, %3, %cst {dimension_numbers = #tpu.dot_dimension_numbers<[1], [1], [0], [0], [0, 0, 1, 0], [], []>} : vector<8x8xf32>, vector<8x8xf32>, vector<8x8xf32> -> vector<8x8xf32>
    %cst_2 = arith.constant 0.353553385 : f32
    %6 = vector.broadcast %cst_2 : f32 to vector<8x8xf32>
    %7 = arith.mulf %5, %6 : vector<8x8xf32>
    %cst_3 = arith.constant dense<0xFF800000> : vector<8xf32>
    %8 = vector.multi_reduction <maximumf>, %7, %cst_3 [1] : vector<8x8xf32> to vector<8xf32>
    %9 = vector.shape_cast %8 : vector<8xf32> to vector<8x1xf32>
    %10 = vector.broadcast %9 : vector<8x1xf32> to vector<8x8xf32>
    %11 = arith.subf %7, %10 : vector<8x8xf32>
    %12 = math.exp %11 : vector<8x8xf32>
    %cst_4 = arith.constant dense<0.000000e+00> : vector<8xf32>
    %13 = vector.multi_reduction <add>, %12, %cst_4 [1] : vector<8x8xf32> to vector<8xf32>
    %14 = vector.shape_cast %13 : vector<8xf32> to vector<8x1xf32>
    %15 = tpu.reciprocal %14 {approx = true} : vector<8x1xf32> -> vector<8x1xf32>
    %16 = vector.broadcast %15 : vector<8x1xf32> to vector<8x8xf32>
    %17 = arith.mulf %12, %16 : vector<8x8xf32>
    %cst_5 = arith.constant dense<0.000000e+00> : vector<8x8xf32>
    %18 = tpu.matmul %17, %4, %cst_5 {dimension_numbers = #tpu.dot_dimension_numbers<[1], [0], [0], [1], [0, 0, 1, 1], [], []>} : vector<8x8xf32>, vector<8x8xf32>, vector<8x8xf32> -> vector<8x8xf32>
    %19 = vector.extract_strided_slice %1 {offsets = [0, 8], sizes = [8, 8], strides = [1, 1]} : vector<8x96xf32> to vector<8x8xf32>
    %20 = vector.extract_strided_slice %1 {offsets = [0, 40], sizes = [8, 8], strides = [1, 1]} : vector<8x96xf32> to vector<8x8xf32>
    %21 = vector.extract_strided_slice %1 {offsets = [0, 72], sizes = [8, 8], strides = [1, 1]} : vector<8x96xf32> to vector<8x8xf32>
    %cst_6 = arith.constant dense<0.000000e+00> : vector<8x8xf32>
    %22 = tpu.matmul %19, %20, %cst_6 {dimension_numbers = #tpu.dot_dimension_numbers<[1], [1], [0], [0], [0, 0, 1, 0], [], []>} : vector<8x8xf32>, vector<8x8xf32>, vector<8x8xf32> -> vector<8x8xf32>
    %cst_7 = arith.constant 0.353553385 : f32
    %23 = vector.broadcast %cst_7 : f32 to vector<8x8xf32>
    %24 = arith.mulf %22, %23 : vector<8x8xf32>
    %cst_8 = arith.constant dense<0xFF800000> : vector<8xf32>
    %25 = vector.multi_reduction <maximumf>, %24, %cst_8 [1] : vector<8x8xf32> to vector<8xf32>
    %26 = vector.shape_cast %25 : vector<8xf32> to vector<8x1xf32>
    %27 = vector.broadcast %26 : vector<8x1xf32> to vector<8x8xf32>
    %28 = arith.subf %24, %27 : vector<8x8xf32>
    %29 = math.exp %28 : vector<8x8xf32>
    %cst_9 = arith.constant dense<0.000000e+00> : vector<8xf32>
    %30 = vector.multi_reduction <add>, %29, %cst_9 [1] : vector<8x8xf32> to vector<8xf32>
    %31 = vector.shape_cast %30 : vector<8xf32> to vector<8x1xf32>
    %32 = tpu.reciprocal %31 {approx = true} : vector<8x1xf32> -> vector<8x1xf32>
    %33 = vector.broadcast %32 : vector<8x1xf32> to vector<8x8xf32>
    %34 = arith.mulf %29, %33 : vector<8x8xf32>
    %cst_10 = arith.constant dense<0.000000e+00> : vector<8x8xf32>
    %35 = tpu.matmul %34, %21, %cst_10 {dimension_numbers = #tpu.dot_dimension_numbers<[1], [0], [0], [1], [0, 0, 1, 1], [], []>} : vector<8x8xf32>, vector<8x8xf32>, vector<8x8xf32> -> vector<8x8xf32>
    %36 = vector.extract_strided_slice %1 {offsets = [0, 16], sizes = [8, 8], strides = [1, 1]} : vector<8x96xf32> to vector<8x8xf32>
    %37 = vector.extract_strided_slice %1 {offsets = [0, 48], sizes = [8, 8], strides = [1, 1]} : vector<8x96xf32> to vector<8x8xf32>
    %38 = vector.extract_strided_slice %1 {offsets = [0, 80], sizes = [8, 8], strides = [1, 1]} : vector<8x96xf32> to vector<8x8xf32>
    %cst_11 = arith.constant dense<0.000000e+00> : vector<8x8xf32>
    %39 = tpu.matmul %36, %37, %cst_11 {dimension_numbers = #tpu.dot_dimension_numbers<[1], [1], [0], [0], [0, 0, 1, 0], [], []>} : vector<8x8xf32>, vector<8x8xf32>, vector<8x8xf32> -> vector<8x8xf32>
    %cst_12 = arith.constant 0.353553385 : f32
    %40 = vector.broadcast %cst_12 : f32 to vector<8x8xf32>
    %41 = arith.mulf %39, %40 : vector<8x8xf32>
    %cst_13 = arith.constant dense<0xFF800000> : vector<8xf32>
    %42 = vector.multi_reduction <maximumf>, %41, %cst_13 [1] : vector<8x8xf32> to vector<8xf32>
    %43 = vector.shape_cast %42 : vector<8xf32> to vector<8x1xf32>
    %44 = vector.broadcast %43 : vector<8x1xf32> to vector<8x8xf32>
    %45 = arith.subf %41, %44 : vector<8x8xf32>
    %46 = math.exp %45 : vector<8x8xf32>
    %cst_14 = arith.constant dense<0.000000e+00> : vector<8xf32>
    %47 = vector.multi_reduction <add>, %46, %cst_14 [1] : vector<8x8xf32> to vector<8xf32>
    %48 = vector.shape_cast %47 : vector<8xf32> to vector<8x1xf32>
    %49 = tpu.reciprocal %48 {approx = true} : vector<8x1xf32> -> vector<8x1xf32>
    %50 = vector.broadcast %49 : vector<8x1xf32> to vector<8x8xf32>
    %51 = arith.mulf %46, %50 : vector<8x8xf32>
    %cst_15 = arith.constant dense<0.000000e+00> : vector<8x8xf32>
    %52 = tpu.matmul %51, %38, %cst_15 {dimension_numbers = #tpu.dot_dimension_numbers<[1], [0], [0], [1], [0, 0, 1, 1], [], []>} : vector<8x8xf32>, vector<8x8xf32>, vector<8x8xf32> -> vector<8x8xf32>
    %53 = vector.extract_strided_slice %1 {offsets = [0, 24], sizes = [8, 8], strides = [1, 1]} : vector<8x96xf32> to vector<8x8xf32>
    %54 = vector.extract_strided_slice %1 {offsets = [0, 56], sizes = [8, 8], strides = [1, 1]} : vector<8x96xf32> to vector<8x8xf32>
    %55 = vector.extract_strided_slice %1 {offsets = [0, 88], sizes = [8, 8], strides = [1, 1]} : vector<8x96xf32> to vector<8x8xf32>
    %cst_16 = arith.constant dense<0.000000e+00> : vector<8x8xf32>
    %56 = tpu.matmul %53, %54, %cst_16 {dimension_numbers = #tpu.dot_dimension_numbers<[1], [1], [0], [0], [0, 0, 1, 0], [], []>} : vector<8x8xf32>, vector<8x8xf32>, vector<8x8xf32> -> vector<8x8xf32>
    %cst_17 = arith.constant 0.353553385 : f32
    %57 = vector.broadcast %cst_17 : f32 to vector<8x8xf32>
    %58 = arith.mulf %56, %57 : vector<8x8xf32>
    %cst_18 = arith.constant dense<0xFF800000> : vector<8xf32>
    %59 = vector.multi_reduction <maximumf>, %58, %cst_18 [1] : vector<8x8xf32> to vector<8xf32>
    %60 = vector.shape_cast %59 : vector<8xf32> to vector<8x1xf32>
    %61 = vector.broadcast %60 : vector<8x1xf32> to vector<8x8xf32>
    %62 = arith.subf %58, %61 : vector<8x8xf32>
    %63 = math.exp %62 : vector<8x8xf32>
    %cst_19 = arith.constant dense<0.000000e+00> : vector<8xf32>
    %64 = vector.multi_reduction <add>, %63, %cst_19 [1] : vector<8x8xf32> to vector<8xf32>
    %65 = vector.shape_cast %64 : vector<8xf32> to vector<8x1xf32>
    %66 = tpu.reciprocal %65 {approx = true} : vector<8x1xf32> -> vector<8x1xf32>
    %67 = vector.broadcast %66 : vector<8x1xf32> to vector<8x8xf32>
    %68 = arith.mulf %63, %67 : vector<8x8xf32>
    %cst_20 = arith.constant dense<0.000000e+00> : vector<8x8xf32>
    %69 = tpu.matmul %68, %55, %cst_20 {dimension_numbers = #tpu.dot_dimension_numbers<[1], [0], [0], [1], [0, 0, 1, 1], [], []>} : vector<8x8xf32>, vector<8x8xf32>, vector<8x8xf32> -> vector<8x8xf32>
    %70 = tpu.concatenate %18, %35, %52, %69 in 1 : vector<8x8xf32>, vector<8x8xf32>, vector<8x8xf32>, vector<8x8xf32> -> vector<8x32xf32>
    %c0_21 = arith.constant 0 : index
    %c0_22 = arith.constant 0 : index
    %c0_23 = arith.constant 0 : index
    %71 = vector.load %arg2[%c0_21, %c0_22, %c0_23] : memref<1x8x32xf32, #tpu.memory_space<vmem>>, vector<1x8x32xf32>
    %72 = vector.shape_cast %71 : vector<1x8x32xf32> to vector<8x32xf32>
    %73 = vector.shape_cast %70 : vector<8x32xf32> to vector<1x8x32xf32>
    tpu.vector_store %arg2[%c0_21, %c0_22, %c0_23], %73 {strides = array<i32>} : memref<1x8x32xf32, #tpu.memory_space<vmem>>, vector<1x8x32xf32>,
    return
  }
  func.func @transform_0(%arg0: i32) -> (i32, i32, i32) {
    %c0_i32 = arith.constant 0 : i32
    %c0_i32_0 = arith.constant 0 : i32
    %c0_i32_1 = arith.constant 0 : i32
    return %arg0, %c0_i32, %c0_i32_0 : i32, i32, i32
  }
  func.func @transform_1(%arg0: i32) -> (i32, i32, i32) {
    %c0_i32 = arith.constant 0 : i32
    %c0_i32_0 = arith.constant 0 : i32
    %c0_i32_1 = arith.constant 0 : i32
    return %arg0, %c0_i32, %c0_i32_0 : i32, i32, i32
  }
}

module attributes {stable_mosaic.version = 11 : i64} {
  func.func @_linear_kernel(%arg0: i32, %arg1: i32, %arg2: i32, %arg3: memref<16x32xf32, #tpu.memory_space<vmem>>, %arg4: memref<32x96xf32, #tpu.memory_space<vmem>>, %arg5: memref<1x96xf32, #tpu.memory_space<vmem>>, %arg6: memref<16x96xf32, #tpu.memory_space<vmem>>, %arg7: memref<16x96xf32, #tpu.memory_space<vmem>>) attributes {dimension_semantics = [#tpu.dimension_semantics<parallel>, #tpu.dimension_semantics<parallel>, #tpu.dimension_semantics<arbitrary>], iteration_bounds = array<i64: 1, 1, 1>, scalar_prefetch = 0 : i64, scratch_operands = 1 : i64, tpu.core_type = #tpu.core_type<tc>, window_params = [{transform_indices = @transform_0, window_bounds = array<i64: 16, 32>}, {transform_indices = @transform_1, window_bounds = array<i64: 32, 96>}, {transform_indices = @transform_2, window_bounds = array<i64: 1, 96>}, {transform_indices = @transform_3, window_bounds = array<i64: 16, 96>}]} {
    %c0_i32 = arith.constant 0 : i32
    %0 = arith.cmpi eq, %arg2, %c0_i32 : i32
    %1 = arith.extui %0 : i1 to i32
    %c0_i32_0 = arith.constant 0 : i32
    %2 = arith.cmpi ne, %1, %c0_i32_0 : i32
    scf.if %2 {
      %cst_10 = arith.constant 0.000000e+00 : f32
      %12 = vector.broadcast %cst_10 : f32 to vector<16x96xf32>
      %c0_11 = arith.constant 0 : index
      %c0_12 = arith.constant 0 : index
      %13 = vector.load %arg7[%c0_11, %c0_12] : memref<16x96xf32, #tpu.memory_space<vmem>>, vector<16x96xf32>
      tpu.vector_store %arg7[%c0_11, %c0_12], %12 {strides = array<i32>} : memref<16x96xf32, #tpu.memory_space<vmem>>, vector<16x96xf32>,
    } else {
    }
    %c0 = arith.constant 0 : index
    %c0_1 = arith.constant 0 : index
    %3 = vector.load %arg7[%c0, %c0_1] : memref<16x96xf32, #tpu.memory_space<vmem>>, vector<16x96xf32>
    %c0_2 = arith.constant 0 : index
    %c0_3 = arith.constant 0 : index
    %4 = vector.load %arg3[%c0_2, %c0_3] : memref<16x32xf32, #tpu.memory_space<vmem>>, vector<16x32xf32>
    %c0_4 = arith.constant 0 : index
    %c0_5 = arith.constant 0 : index
    %5 = vector.load %arg4[%c0_4, %c0_5] : memref<32x96xf32, #tpu.memory_space<vmem>>, vector<32x96xf32>
    %cst = arith.constant dense<0.000000e+00> : vector<16x96xf32>
    %6 = tpu.matmul %4, %5, %cst {dimension_numbers = #tpu.dot_dimension_numbers<[1], [0], [0], [1], [0, 0, 1, 1], [], []>} : vector<16x32xf32>, vector<32x96xf32>, vector<16x96xf32> -> vector<16x96xf32>
    %7 = arith.addf %3, %6 : vector<16x96xf32>
    %c0_6 = arith.constant 0 : index
    %c0_7 = arith.constant 0 : index
    %8 = vector.load %arg7[%c0_6, %c0_7] : memref<16x96xf32, #tpu.memory_space<vmem>>, vector<16x96xf32>
    tpu.vector_store %arg7[%c0_6, %c0_7], %7 {strides = array<i32>} : memref<16x96xf32, #tpu.memory_space<vmem>>, vector<16x96xf32>,
    %c0_i32_8 = arith.constant 0 : i32
    %9 = arith.cmpi eq, %arg2, %c0_i32_8 : i32
    %10 = arith.extui %9 : i1 to i32
    %c0_i32_9 = arith.constant 0 : i32
    %11 = arith.cmpi ne, %10, %c0_i32_9 : i32
    scf.if %11 {
      %c0_10 = arith.constant 0 : index
      %c0_11 = arith.constant 0 : index
      %12 = vector.load %arg7[%c0_10, %c0_11] : memref<16x96xf32, #tpu.memory_space<vmem>>, vector<16x96xf32>
      %c0_12 = arith.constant 0 : index
      %c0_13 = arith.constant 0 : index
      %13 = vector.load %arg5[%c0_12, %c0_13] : memref<1x96xf32, #tpu.memory_space<vmem>>, vector<1x96xf32>
      %14 = vector.broadcast %13 : vector<1x96xf32> to vector<16x96xf32>
      %15 = arith.addf %12, %14 : vector<16x96xf32>
      %c0_14 = arith.constant 0 : index
      %c0_15 = arith.constant 0 : index
      %16 = vector.load %arg6[%c0_14, %c0_15] : memref<16x96xf32, #tpu.memory_space<vmem>>, vector<16x96xf32>
      tpu.vector_store %arg6[%c0_14, %c0_15], %15 {strides = array<i32>} : memref<16x96xf32, #tpu.memory_space<vmem>>, vector<16x96xf32>,
    } else {
    }
    return
  }
  func.func @transform_0(%arg0: i32, %arg1: i32, %arg2: i32) -> (i32, i32) {
    %c0_i32 = arith.constant 0 : i32
    return %arg0, %arg2 : i32, i32
  }
  func.func @transform_1(%arg0: i32, %arg1: i32, %arg2: i32) -> (i32, i32) {
    %c0_i32 = arith.constant 0 : i32
    return %arg2, %arg1 : i32, i32
  }
  func.func @transform_2(%arg0: i32, %arg1: i32, %arg2: i32) -> (i32, i32) {
    %c0_i32 = arith.constant 0 : i32
    %c0_i32_0 = arith.constant 0 : i32
    return %c0_i32, %arg1 : i32, i32
  }
  func.func @transform_3(%arg0: i32, %arg1: i32, %arg2: i32) -> (i32, i32) {
    %c0_i32 = arith.constant 0 : i32
    return %arg0, %arg1 : i32, i32
  }
}

module attributes {stable_mosaic.version = 11 : i64} {
  func.func @_ffn_kernel(%arg0: i32, %arg1: i32, %arg2: memref<16x32xf32, #tpu.memory_space<vmem>>, %arg3: memref<32x128xf32, #tpu.memory_space<vmem>>, %arg4: memref<1x128xf32, #tpu.memory_space<vmem>>, %arg5: memref<128x32xf32, #tpu.memory_space<vmem>>, %arg6: memref<1x32xf32, #tpu.memory_space<vmem>>, %arg7: memref<16x32xf32, #tpu.memory_space<vmem>>, %arg8: memref<16x32xf32, #tpu.memory_space<vmem>>) attributes {dimension_semantics = [#tpu.dimension_semantics<parallel>, #tpu.dimension_semantics<arbitrary>], iteration_bounds = array<i64: 1, 1>, scalar_prefetch = 0 : i64, scratch_operands = 1 : i64, tpu.core_type = #tpu.core_type<tc>, window_params = [{transform_indices = @transform_0, window_bounds = array<i64: 16, 32>}, {transform_indices = @transform_1, window_bounds = array<i64: 32, 128>}, {transform_indices = @transform_2, window_bounds = array<i64: 1, 128>}, {transform_indices = @transform_3, window_bounds = array<i64: 128, 32>}, {pipeline_mode = #tpu.pipeline_mode<synchronous>, transform_indices = @transform_4, window_bounds = array<i64: 1, 32>}, {transform_indices = @transform_5, window_bounds = array<i64: 16, 32>}]} {
    %c0_i32 = arith.constant 0 : i32
    %0 = arith.cmpi eq, %arg1, %c0_i32 : i32
    %1 = arith.extui %0 : i1 to i32
    %c0_i32_0 = arith.constant 0 : i32
    %2 = arith.cmpi ne, %1, %c0_i32_0 : i32
    scf.if %2 {
      %cst_16 = arith.constant 0.000000e+00 : f32
      %19 = vector.broadcast %cst_16 : f32 to vector<16x32xf32>
      %c0_17 = arith.constant 0 : index
      %c0_18 = arith.constant 0 : index
      %20 = vector.load %arg8[%c0_17, %c0_18] : memref<16x32xf32, #tpu.memory_space<vmem>>, vector<16x32xf32>
      tpu.vector_store %arg8[%c0_17, %c0_18], %19 {strides = array<i32>} : memref<16x32xf32, #tpu.memory_space<vmem>>, vector<16x32xf32>,
    } else {
    }
    %c0 = arith.constant 0 : index
    %c0_1 = arith.constant 0 : index
    %3 = vector.load %arg2[%c0, %c0_1] : memref<16x32xf32, #tpu.memory_space<vmem>>, vector<16x32xf32>
    %c0_2 = arith.constant 0 : index
    %c0_3 = arith.constant 0 : index
    %4 = vector.load %arg3[%c0_2, %c0_3] : memref<32x128xf32, #tpu.memory_space<vmem>>, vector<32x128xf32>
    %cst = arith.constant dense<0.000000e+00> : vector<16x128xf32>
    %5 = tpu.matmul %3, %4, %cst {dimension_numbers = #tpu.dot_dimension_numbers<[1], [0], [0], [1], [0, 0, 1, 1], [], []>} : vector<16x32xf32>, vector<32x128xf32>, vector<16x128xf32> -> vector<16x128xf32>
    %c0_4 = arith.constant 0 : index
    %c0_5 = arith.constant 0 : index
    %6 = vector.load %arg4[%c0_4, %c0_5] : memref<1x128xf32, #tpu.memory_space<vmem>>, vector<1x128xf32>
    %7 = vector.broadcast %6 : vector<1x128xf32> to vector<16x128xf32>
    %8 = arith.addf %5, %7 : vector<16x128xf32>
    %cst_6 = arith.constant 0.000000e+00 : f32
    %9 = vector.broadcast %cst_6 : f32 to vector<16x128xf32>
    %10 = arith.maximumf %8, %9 : vector<16x128xf32>
    %c0_7 = arith.constant 0 : index
    %c0_8 = arith.constant 0 : index
    %11 = vector.load %arg8[%c0_7, %c0_8] : memref<16x32xf32, #tpu.memory_space<vmem>>, vector<16x32xf32>
    %c0_9 = arith.constant 0 : index
    %c0_10 = arith.constant 0 : index
    %12 = vector.load %arg5[%c0_9, %c0_10] : memref<128x32xf32, #tpu.memory_space<vmem>>, vector<128x32xf32>
    %cst_11 = arith.constant dense<0.000000e+00> : vector<16x32xf32>
    %13 = tpu.matmul %10, %12, %cst_11 {dimension_numbers = #tpu.dot_dimension_numbers<[1], [0], [0], [1], [0, 0, 1, 1], [], []>} : vector<16x128xf32>, vector<128x32xf32>, vector<16x32xf32> -> vector<16x32xf32>
    %14 = arith.addf %11, %13 : vector<16x32xf32>
    %c0_12 = arith.constant 0 : index
    %c0_13 = arith.constant 0 : index
    %15 = vector.load %arg8[%c0_12, %c0_13] : memref<16x32xf32, #tpu.memory_space<vmem>>, vector<16x32xf32>
    tpu.vector_store %arg8[%c0_12, %c0_13], %14 {strides = array<i32>} : memref<16x32xf32, #tpu.memory_space<vmem>>, vector<16x32xf32>,
    %c0_i32_14 = arith.constant 0 : i32
    %16 = arith.cmpi eq, %arg1, %c0_i32_14 : i32
    %17 = arith.extui %16 : i1 to i32
    %c0_i32_15 = arith.constant 0 : i32
    %18 = arith.cmpi ne, %17, %c0_i32_15 : i32
    scf.if %18 {
      %c0_16 = arith.constant 0 : index
      %c0_17 = arith.constant 0 : index
      %19 = vector.load %arg8[%c0_16, %c0_17] : memref<16x32xf32, #tpu.memory_space<vmem>>, vector<16x32xf32>
      %c0_18 = arith.constant 0 : index
      %c0_19 = arith.constant 0 : index
      %20 = vector.load %arg6[%c0_18, %c0_19] : memref<1x32xf32, #tpu.memory_space<vmem>>, vector<1x32xf32>
      %21 = vector.broadcast %20 : vector<1x32xf32> to vector<16x32xf32>
      %22 = arith.addf %19, %21 : vector<16x32xf32>
      %c0_20 = arith.constant 0 : index
      %c0_21 = arith.constant 0 : index
      %23 = vector.load %arg7[%c0_20, %c0_21] : memref<16x32xf32, #tpu.memory_space<vmem>>, vector<16x32xf32>
      tpu.vector_store %arg7[%c0_20, %c0_21], %22 {strides = array<i32>} : memref<16x32xf32, #tpu.memory_space<vmem>>, vector<16x32xf32>,
    } else {
    }
    return
  }
  func.func @transform_0(%arg0: i32, %arg1: i32) -> (i32, i32) {
    %c0_i32 = arith.constant 0 : i32
    %c0_i32_0 = arith.constant 0 : i32
    return %arg0, %c0_i32 : i32, i32
  }
  func.func @transform_1(%arg0: i32, %arg1: i32) -> (i32, i32) {
    %c0_i32 = arith.constant 0 : i32
    %c0_i32_0 = arith.constant 0 : i32
    return %c0_i32, %arg1 : i32, i32
  }
  func.func @transform_2(%arg0: i32, %arg1: i32) -> (i32, i32) {
    %c0_i32 = arith.constant 0 : i32
    %c0_i32_0 = arith.constant 0 : i32
    return %c0_i32, %arg1 : i32, i32
  }
  func.func @transform_3(%arg0: i32, %arg1: i32) -> (i32, i32) {
    %c0_i32 = arith.constant 0 : i32
    %c0_i32_0 = arith.constant 0 : i32
    return %arg1, %c0_i32 : i32, i32
  }
  func.func @transform_4(%arg0: i32, %arg1: i32) -> (i32, i32) {
    %c0_i32 = arith.constant 0 : i32
    %c0_i32_0 = arith.constant 0 : i32
    %c0_i32_1 = arith.constant 0 : i32
    return %c0_i32, %c0_i32_0 : i32, i32
  }
  func.func @transform_5(%arg0: i32, %arg1: i32) -> (i32, i32) {
    %c0_i32 = arith.constant 0 : i32
    %c0_i32_0 = arith.constant 0 : i32
    return %arg0, %c0_i32 : i32, i32
  }
}

</mosaic_0001>

<bundles_post_ra>
// kernel: transformer_encoder.8
= control target key start
LH: loop header
LB: loop body
LE: loop exit
PB: predicated region body
PF: predicated region fallthrough
CT: control target
= control target key end

     0   :  { %vm29_vm0 = vcmask 261120   ;;  %vm18_vm1 = vcmask 785408   ;;  %v157_v2 = vmov 0.0   ;;  %s213_s1 = inlined_call_operand.vmem [shape: f32[32,96], index: 1, kind: input, shape index: {}]   ;;  %s214_s0 = inlined_call_operand.vmem [shape: f32[16,32], index: 0, kind: input, shape index: {}]   ;;  %s215_s2 = inlined_call_operand.vmem [shape: f32[1,96], index: 2, kind: input, shape index: {}]   ;;  %s216_s3 = inlined_call_operand.vmem [shape: f32[16,96], index: 3, kind: output, shape index: {}]  }
   0x1   :  { %v28_v0 = vld [vmem:[%s213_s1 + $0x18] sm:$0xff]  ;;  %v27_v1 = vld [vmem:[%s213_s1 + $0x10] sm:$0xff]  ;;  %20 = vst.msk [vmem:[#allocation2 + $0x8] sm:$0xff] %vm18_vm1, %v157_v2  ;;  %19 = vst.msk [vmem:[#allocation2] sm:$0xff] %vm18_vm1, %v157_v2 }
   0x2   :  { %145 = vmatprep.subr.mxu0 %v28_v0  ;;  %v23_v3 = vld [vmem:[%s214_s0] sm:$0xff]  ;;  %v26_v4 = vld [vmem:[%s213_s1 + $0x8] sm:$0xff] }
   0x3   :  { %146 = vmatpush3.msra.mxu0 %v28_v0  ;;  %153 = vmatprep.mubr.msk.f32.mxu0 %vm29_vm0, %v23_v3  ;;  %v25_v5 = vld [vmem:[%s213_s1] sm:$0xff]  ;;  %v24_v6 = vld [vmem:[%s214_s0 + $0x8] sm:$0xff] }
   0x4   :  { %147 = vmatprep.subr.mxu0 %v27_v1  ;;  %v138_v13 = vld [vmem:[%s215_s2] ss:$0 sm:$0xff] }
   0x5   :  { %148 = vmatpush3.msra.mxu0 %v27_v1 }
   0x6   :  { %149 = vmatprep.subr.mxu0 %v26_v4 }
   0x7   :  { %150 = vmatpush3.msra.mxu0 %v26_v4 }
   0x8   :  { %151 = vmatprep.subr.mxu0 %v25_v5  ;;  %v22_v7 = vld [vmem:[#allocation2 + $0x8] sm:$0xff]  ;;  %v21_v9 = vld [vmem:[#allocation2] sm:$0xff] }
   0x9   :  { %152 = vmatpush3.msra.mxu0 %v25_v5 }
   0xa   :  { %154 = vmatmul.mubr.msk.f32.vlgmr.msra.gmra.mxu0 %vm29_vm0, %v24_v6 }
  0xca   :  { %v155_v8 = vpop.f32.mrf.mxu0 }
  0xcb   :  { %v112_v10 = vadd.f32 %v155_v8, %v22_v7 }
  0xcc   :  { %v102_v11 = vpop.f32.mrf.mxu0 }
  0xcd   :  { %115 = vst.msk [vmem:[#allocation2 + $0x8] sm:$0xff] %vm18_vm1, %v112_v10  ;;  %v111_v12 = vadd.f32 %v102_v11, %v21_v9 }
  0xcf   :  { %114 = vst.msk [vmem:[#allocation2] sm:$0xff] %vm18_vm1, %v111_v12 }
  0xd4   :  { %v120_v14 = vld [vmem:[#allocation2 + $0x8] sm:$0xff] }
  0xd5   :  { %v129_v15 = vadd.f32 %v138_v13, %v120_v14 }
  0xd6   :  { %v119_v16 = vld [vmem:[#allocation2] sm:$0xff] }
  0xd7   :  { %131 = vst.msk [vmem:[%s216_s3 + $0x8] sm:$0xff] %vm18_vm1, %v129_v15  ;;  %v128_v17 = vadd.f32 %v138_v13, %v119_v16 }
  0xd9   :  { %130 = vst.msk [vmem:[%s216_s3] sm:$0xff] %vm18_vm1, %v128_v17 }

// kernel: transformer_encoder.10
= control target key start
LH: loop header
LB: loop body
LE: loop exit
PB: predicated region body
PF: predicated region fallthrough
CT: control target
= control target key end

     0   :  { %vm18_vm0 = vcmask 261120   ;;  %v156_v2 = vmov 0.0   ;;  %s212_s1 = inlined_call_operand.vmem [shape: f32[32,32], index: 1, kind: input, shape index: {}]   ;;  %s213_s0 = inlined_call_operand.vmem [shape: f32[16,32], index: 0, kind: input, shape index: {}]   ;;  %s214_s2 = inlined_call_operand.vmem [shape: f32[1,32], index: 2, kind: input, shape index: {}]   ;;  %s215_s3 = inlined_call_operand.vmem [shape: f32[16,32], index: 3, kind: output, shape index: {}]  }
   0x1   :  { %v28_v0 = vld [vmem:[%s212_s1 + $0x18] sm:$0xff]  ;;  %v27_v1 = vld [vmem:[%s212_s1 + $0x10] sm:$0xff]  ;;  %20 = vst.msk [vmem:[#allocation2 + $0x8] sm:$0xff] %vm18_vm0, %v156_v2  ;;  %19 = vst.msk [vmem:[#allocation2] sm:$0xff] %vm18_vm0, %v156_v2 }
   0x2   :  { %144 = vmatprep.subr.mxu0 %v28_v0  ;;  %v23_v3 = vld [vmem:[%s213_s0] sm:$0xff]  ;;  %v26_v4 = vld [vmem:[%s212_s1 + $0x8] sm:$0xff] }
   0x3   :  { %145 = vmatpush3.msra.mxu0 %v28_v0  ;;  %152 = vmatprep.mubr.msk.f32.mxu0 %vm18_vm0, %v23_v3  ;;  %v25_v5 = vld [vmem:[%s212_s1] sm:$0xff]  ;;  %v24_v6 = vld [vmem:[%s213_s0 + $0x8] sm:$0xff] }
   0x4   :  { %146 = vmatprep.subr.mxu0 %v27_v1  ;;  %v137_v13 = vld [vmem:[%s214_s2] ss:$0 sm:$0xff] }
   0x5   :  { %147 = vmatpush3.msra.mxu0 %v27_v1 }
   0x6   :  { %148 = vmatprep.subr.mxu0 %v26_v4 }
   0x7   :  { %149 = vmatpush3.msra.mxu0 %v26_v4 }
   0x8   :  { %150 = vmatprep.subr.mxu0 %v25_v5  ;;  %v22_v7 = vld [vmem:[#allocation2 + $0x8] sm:$0xff]  ;;  %v21_v9 = vld [vmem:[#allocation2] sm:$0xff] }
   0x9   :  { %151 = vmatpush3.msra.mxu0 %v25_v5 }
   0xa   :  { %153 = vmatmul.mubr.msk.f32.vlgmr.msra.gmra.mxu0 %vm18_vm0, %v24_v6 }
  0xca   :  { %v154_v8 = vpop.f32.mrf.mxu0 }
  0xcb   :  { %v112_v10 = vadd.f32 %v154_v8, %v22_v7 }
  0xcc   :  { %v102_v11 = vpop.f32.mrf.mxu0 }
  0xcd   :  { %114 = vst.msk [vmem:[#allocation2 + $0x8] sm:$0xff] %vm18_vm0, %v112_v10  ;;  %v111_v12 = vadd.f32 %v102_v11, %v21_v9 }
  0xcf   :  { %113 = vst.msk [vmem:[#allocation2] sm:$0xff] %vm18_vm0, %v111_v12 }
  0xd4   :  { %v119_v14 = vld [vmem:[#allocation2 + $0x8] sm:$0xff] }
  0xd5   :  { %v128_v15 = vadd.f32 %v137_v13, %v119_v14 }
  0xd6   :  { %v118_v16 = vld [vmem:[#allocation2] sm:$0xff] }
  0xd7   :  { %130 = vst.msk [vmem:[%s215_s3 + $0x8] sm:$0xff] %vm18_vm0, %v128_v15  ;;  %v127_v17 = vadd.f32 %v137_v13, %v118_v16 }
  0xd9   :  { %129 = vst.msk [vmem:[%s215_s3] sm:$0xff] %vm18_vm0, %v127_v17 }

// kernel: transformer_encoder.9
= control target key start
LH: loop header
LB: loop body
LE: loop exit
PB: predicated region body
PF: predicated region fallthrough
CT: control target
= control target key end

     0   :  { %s1000_s6 = smov 0   ;;  %s1086_s0 = inlined_call_operand.vmem [shape: f32[2,8,96], index: 0, kind: input, shape index: {}]   ;;  %s1087_s1 = inlined_call_operand.vmem [shape: f32[2,8,32], index: 1, kind: output, shape index: {}]  }
   0x1 LB: > { %s849_s7 = sadd.s32 4294967295, %s972_s6   ;;  %p853_p0 = scmp.ge.s32.totalorder %s972_s6, 1  ;;  %s972_s6 = sphi %s1000_s6, %s11_s6  }
   0x2   : > { %p86_p1 = scmp.lt.s32.totalorder %s972_s6, 3 }
   0x4   : > { %p87_p2 = pnand %p853_p0, %p86_p1 }
   0x5   : > { %p104_p3 = scmp.lt.s32.totalorder (!%p87_p2), %s849_s7, 1  ;;  %s976_s12 = smov (!%p87_p2), 96  }
   0x6   : > { %90 = sbr.rel (%p87_p2) target bundleno = 1469 (0x5bd), region = 24  ;;  %s977_s13 = smov (!%p87_p2), 64  }
   0x7   : > { %s978_s14 = smov (!%p87_p2), 88   ;;  %s979_s15 = smov (!%p87_p2), 120  }
   0x8   : > { %s980_s16 = smov (!%p87_p2), 80   ;;  %s981_s17 = smov (!%p87_p2), 72  }
   0x9   : > { %s982_s18 = smov (!%p87_p2), 112   ;;  %s983_s19 = smov (!%p87_p2), 104  }
   0xa   : > { %s984_s20 = smov (!%p87_p2), 56   ;;  %s985_s21 = smov (!%p87_p2), 40  }
   0xb   : > { %v974_v0 = vmov 0.0   ;;  %vm975_vm0 = vmmov 0   ;;  %s1089_s7 = smov (!%p104_p3, %s849_s7), 1  ;;  %vm116_vm1 = vcmask 64512   ;;  %s986_s22 = smov 48   ;;  %vm790_vm2 = vcmask 130048  }
   0xc   : > { %886 = vmatprep.subr.mxu0 %v974_v0  ;;  %888 = vmatprep.mubr.msk.f32.mxu0 %vm975_vm0, %v974_v0  ;;  %s854_s8 = sshll.u32 %s1089_s7, 3  ;;  %s987_s23 = smov 8   ;;  %vm792_vm3 = vcmask 195584   ;;  %vm794_vm4 = vcmask 261120  }
   0xd   : > { %891 = vmatprep.subr.mxu1 %v974_v0  ;;  %893 = vmatprep.mubr.msk.f32.mxu1 %vm975_vm0, %v974_v0  ;;  %s107_s11 = scalar_lea.vmem %s1086_s0, %s854_s8  ;;  %s988_s24 = smov 16  }
   0xe   : > { %v1022_v1 = vld [vmem:[%s107_s11] sm:$0xff]  ;;  %s989_s25 = smov 24   ;;  %s111_s28 = scalar_lea.vmem %s1087_s1, %s854_s8 }
   0xf   : > { %114 = vrot.lane.b32.xlu0 %v1022_v1, %s976_s12  ;;  %203 = vrot.lane.b32.xlu1 %v1022_v1, %s977_s13 }
  0x13   : > { %281 = vrot.lane.b32.xlu1 %v1022_v1, %s978_s14 }
  0x17   : > { %279 = vrot.lane.b32.xlu1 %v1022_v1, %s979_s15 }
  0x1b   : > { %447 = vrot.lane.b32.xlu1 %v1022_v1, %s980_s16 }
  0x81   : > { %v115_v2 = vpop.permute.xlu0 %114  ;;  %v204_v7 = vpop.permute.xlu1 %203 }
  0x82   : > { %887 = vmatpush3.xpose.msk.msra.mxu0 %vm116_vm1, %v115_v2  ;;  %892 = vmatpush3.msra.mxu1 %v204_v7 }
  0x83   : > { %901 = vmatprep.subr.mxu0 %v974_v0  ;;  %896 = vmatprep.subr.mxu1 %v974_v0 }
  0x85   : > { %889 = vmatmul.mubr.msk.f32.vlgmr.msra.gmra.mxu0 %vm116_vm1, %v1022_v1  ;;  %v282_v13 = vpop.permute.xlu1 %281 }
  0x86   : > { %903 = vmatprep.mubr.msk.f32.mxu0 %vm975_vm0, %v974_v0 }
  0x89   : > { %v280_v14 = vpop.permute.xlu1 %279 }
  0x8d   : > { %v448_v15 = vpop.permute.xlu1 %447 }
 0x145   : > { %v187_v3 = vpop.f32.mrf.mxu0 }
 0x146   : > { %v191_v4 = vmul.f32 0.35355338, %v187_v3 }
 0x147   : > { %v890_v5 = vpop.f32.mrf.mxu0 }
 0x148   : > { %v192_v6 = vsel %vm116_vm1, %v191_v4, -inf }
 0x149   : > { %193 = vmax.xlane.f32.xlu0 %v192_v6 }
 0x15f   : > { %613 = vrot.lane.b32.xlu0 %v1022_v1, %s981_s17 }
 0x1d2   : > { %v194_v8 = vpop.xlane.xlu0 %193 }
 0x1d3   : > { %v195_v9 = vsub.f32 %v191_v4, %v194_v8 }
 0x1d5   : > { %v196_v10 = vmul.f32 1.442695, %v195_v9 }
 0x1d6   : > { %v614_v20 = vpop.permute.xlu0 %613 }
 0x1d7   : > { %950 = vpow2.f32 %v196_v10 }
 0x1e4   : > { %v951_v11 = vpop.eup %950 }
 0x1e5   : > { %v198_v12 = vsel %vm116_vm1, %v951_v11, 0.0 }
 0x1e6   : > { %199 = vadd.xlane.f32.xlu1 %v198_v12 }
 0x1f7   : > { %445 = vrot.lane.b32.xlu1 %v1022_v1, %s982_s18 }
 0x1fb   : > { %611 = vrot.lane.b32.xlu1 %v1022_v1, %s983_s19 }
 0x26f   : > { %v200_v16 = vpop.xlane.xlu1 %199 }
 0x270   : > { %952 = vrcp.f32 %v200_v16 }
 0x273   : > { %v446_v19 = vpop.permute.xlu1 %445 }
 0x277   : > { %v612_v21 = vpop.permute.xlu1 %611 }
 0x27d   : > { %v953_v17 = vpop.eup %952 }
 0x27e   : > { %v202_v18 = vmul.f32 %v953_v17, %v951_v11 }
 0x280   : > { %894 = vmatmul.mubr.msk.f32.vlgmr.msra.gmra.mxu1 %vm116_vm1, %v202_v18 }
 0x281   : > { %897 = vmatpush3.xpose.msk.msra.mxu1 %vm116_vm1, %v282_v13  ;;  %898 = vmatprep.mubr.msk.f32.mxu1 %vm975_vm0, %v974_v0 }
 0x282   : > { %906 = vmatprep.subr.mxu1 %v974_v0 }
 0x284   : > { %899 = vmatmul.mubr.msk.f32.vlgmr.msra.gmra.mxu1 %vm116_vm1, %v280_v14 }
 0x285   : > { %907 = vmatpush3.xpose.msk.msra.mxu1 %vm116_vm1, %v448_v15  ;;  %908 = vmatprep.mubr.msk.f32.mxu1 %vm975_vm0, %v974_v0 }
 0x286   : > { %916 = vmatprep.subr.mxu1 %v974_v0 }
 0x288   : > { %909 = vmatmul.mubr.msk.f32.vlgmr.msra.gmra.mxu1 %vm116_vm1, %v446_v19 }
 0x289   : > { %917 = vmatpush3.xpose.msk.msra.mxu1 %vm116_vm1, %v614_v20  ;;  %918 = vmatprep.mubr.msk.f32.mxu1 %vm975_vm0, %v974_v0 }
 0x28c   : > { %919 = vmatmul.mubr.msk.f32.vlgmr.msra.gmra.mxu1 %vm116_vm1, %v612_v21 }
 0x340   : > { %v1056_v22 = vpop.f32.mrf.mxu1 }
 0x342   : > { %v895_v23 = vpop.f32.mrf.mxu1 }
 0x344   : > { %v353_v24 = vpop.f32.mrf.mxu1 }
 0x345   : > { %v357_v25 = vmul.f32 0.35355338, %v353_v24 }
 0x346   : > { %v900_v26 = vpop.f32.mrf.mxu1 }
 0x347   : > { %v358_v27 = vsel %vm116_vm1, %v357_v25, -inf }
 0x348   : > { %359 = vmax.xlane.f32.xlu1 %v358_v27  ;;  %v519_v28 = vpop.f32.mrf.mxu1 }
 0x349   : > { %v523_v29 = vmul.f32 0.35355338, %v519_v28 }
 0x34a   : > { %v910_v30 = vpop.f32.mrf.mxu1 }
 0x34b   : > { %v524_v31 = vsel %vm116_vm1, %v523_v29, -inf }
 0x34c   : > { %525 = vmax.xlane.f32.xlu0 %v524_v31  ;;  %v685_v32 = vpop.f32.mrf.mxu1 }
 0x34d   : > { %v689_v33 = vmul.f32 0.35355338, %v685_v32 }
 0x34e   : > { %v920_v34 = vpop.f32.mrf.mxu1 }
 0x34f   : > { %v690_v35 = vsel %vm116_vm1, %v689_v33, -inf }
 0x350   : > { %691 = vmax.xlane.f32.xlu1 %v690_v35 }
 0x361   : > { %369 = vrot.lane.b32.xlu1 %v1022_v1, %s984_s20 }
 0x3d1   : > { %v360_v36 = vpop.xlane.xlu1 %359 }
 0x3d2   : > { %v361_v37 = vsub.f32 %v357_v25, %v360_v36 }
 0x3d4   : > { %v362_v38 = vmul.f32 1.442695, %v361_v37 }
 0x3d5   : > { %v526_v39 = vpop.xlane.xlu0 %525 }
 0x3d6   : > { %954 = vpow2.f32 %v362_v38  ;;  %v527_v40 = vsub.f32 %v523_v29, %v526_v39 }
 0x3d8   : > { %v528_v41 = vmul.f32 1.442695, %v527_v40 }
 0x3d9   : > { %v692_v42 = vpop.xlane.xlu1 %691 }
 0x3da   : > { %956 = vpow2.f32 %v528_v41  ;;  %v693_v43 = vsub.f32 %v689_v33, %v692_v42 }
 0x3dc   : > { %v694_v44 = vmul.f32 1.442695, %v693_v43 }
 0x3dd   : > { %v370_v45 = vpop.permute.xlu1 %369 }
 0x3de   : > { %958 = vpow2.f32 %v694_v44  ;;  %902 = vmatpush3.msra.mxu0 %v370_v45 }
 0x3df   : > { %911 = vmatprep.subr.mxu0 %v974_v0 }
 0x3e3   : > { %v955_v46 = vpop.eup %954 }
 0x3e4   : > { %v364_v47 = vsel %vm116_vm1, %v955_v46, 0.0 }
 0x3e5   : > { %365 = vadd.xlane.f32.xlu1 %v364_v47 }
 0x3e7   : > { %v957_v48 = vpop.eup %956 }
 0x3e8   : > { %v530_v49 = vsel %vm116_vm1, %v957_v48, 0.0 }
 0x3e9   : > { %531 = vadd.xlane.f32.xlu1 %v530_v49 }
 0x3eb   : > { %v959_v50 = vpop.eup %958 }
 0x3ec   : > { %v696_v51 = vsel %vm116_vm1, %v959_v50, 0.0 }
 0x3ed   : > { %697 = vadd.xlane.f32.xlu0 %v696_v51 }
 0x3fa   : > { %701 = vrot.lane.b32.xlu1 %v1022_v1, %s985_s21 }
 0x403   : > { %535 = vrot.lane.b32.xlu0 %v1022_v1, %s986_s22 }
 0x46e   : > { %v366_v52 = vpop.xlane.xlu1 %365 }
 0x46f   : > { %960 = vrcp.f32 %v366_v52 }
 0x472   : > { %v532_v53 = vpop.xlane.xlu1 %531 }
 0x473   : > { %962 = vrcp.f32 %v532_v53 }
 0x476   : > { %v698_v54 = vpop.xlane.xlu0 %697  ;;  %v702_v59 = vpop.permute.xlu1 %701 }
 0x477   : > { %964 = vrcp.f32 %v698_v54 }
 0x47a   : > { %v536_v56 = vpop.permute.xlu0 %535 }
 0x47c   : > { %v961_v55 = vpop.eup %960 }
 0x47d   : > { %v368_v57 = vmul.f32 %v961_v55, %v955_v46 }
 0x47f   : > { %904 = vmatmul.mubr.msk.f32.vlgmr.msra.gmra.mxu0 %vm116_vm1, %v368_v57 }
 0x480   : > { %v963_v58 = vpop.eup %962  ;;  %912 = vmatpush3.msra.mxu0 %v536_v56  ;;  %913 = vmatprep.mubr.msk.f32.mxu0 %vm975_vm0, %v974_v0 }
 0x481   : > { %921 = vmatprep.subr.mxu0 %v974_v0  ;;  %v534_v60 = vmul.f32 %v963_v58, %v957_v48 }
 0x483   : > { %914 = vmatmul.mubr.msk.f32.vlgmr.msra.gmra.mxu0 %vm116_vm1, %v534_v60 }
 0x484   : > { %v965_v61 = vpop.eup %964  ;;  %922 = vmatpush3.msra.mxu0 %v702_v59  ;;  %923 = vmatprep.mubr.msk.f32.mxu0 %vm975_vm0, %v974_v0 }
 0x485   : > { %v700_v62 = vmul.f32 %v965_v61, %v959_v50 }
 0x487   : > { %924 = vmatmul.mubr.msk.f32.vlgmr.msra.gmra.mxu0 %vm116_vm1, %v700_v62 }
 0x53f   : > { %v441_v63 = vpop.f32.mrf.mxu0 }
 0x540   : > { %778 = vrot.lane.b32.xlu1 %v441_v63, %s987_s23 }
 0x541   : > { %v905_v1 = vpop.f32.mrf.mxu0 }
 0x543   : > { %v607_v2 = vpop.f32.mrf.mxu0 }
 0x544   : > { %782 = vrot.lane.b32.xlu0 %v607_v2, %s988_s24 }
 0x545   : > { %v915_v3 = vpop.f32.mrf.mxu0 }
 0x547   : > { %v773_v4 = vpop.f32.mrf.mxu0 }
 0x548   : > { %786 = vrot.lane.b32.xlu1 %v773_v4, %s989_s25 }
 0x549   : > { %v925_v5 = vpop.f32.mrf.mxu0 }
 0x5b2   : > { %v779_v6 = vpop.permute.xlu1 %778 }
 0x5b3   : > { %v789_v0 = vsel %vm116_vm1, %v1056_v22, %v779_v6 }
 0x5b6   : > { %v783_v7 = vpop.permute.xlu0 %782 }
 0x5b7   : > { %v791_v8 = vsel %vm790_vm2, %v789_v0, %v783_v7 }
 0x5ba   : > { %v787_v9 = vpop.permute.xlu1 %786 }
 0x5bb   : > { %v793_v10 = vsel %vm792_vm3, %v791_v8, %v787_v9 }
 0x5bc   : > { %795 = vst.msk [vmem:[%s111_s28] sm:$0xff] %vm794_vm4, %v793_v10 }
 0x5bd PF: > { %s11_s6 = sadd.s32 1, %s972_s6  }
 0x5be   : > { %p8_p4 = scmp.ge.s32.totalorder %s11_s6, 4  }
 0x5c0   :  { %10 = sbr.rel (!%p8_p4) target bundleno = 1 (0x1), region = 54 }

// kernel: transformer_encoder.11
= control target key start
LH: loop header
LB: loop body
LE: loop exit
PB: predicated region body
PF: predicated region fallthrough
CT: control target
= control target key end

     0   :  { %vm24_vm0 = vcmask 261120   ;;  %v316_v22 = vmov 0.0   ;;  %s433_s1 = inlined_call_operand.vmem [shape: f32[32,128], index: 1, kind: input, shape index: {}]   ;;  %s434_s0 = inlined_call_operand.vmem [shape: f32[16,32], index: 0, kind: input, shape index: {}]   ;;  %s435_s3 = inlined_call_operand.vmem [shape: f32[128,32], index: 3, kind: input, shape index: {}]   ;;  %s436_s2 = inlined_call_operand.vmem [shape: f32[1,128], index: 2, kind: input, shape index: {}]   ;;  %s437_s4 = inlined_call_operand.vmem [shape: f32[1,32], index: 4, kind: input, shape index: {}]   ;;  %s438_s5 = inlined_call_operand.vmem [shape: f32[16,32], index: 5, kind: output, shape index: {}]  }
   0x1   :  { %v32_v0 = vld [vmem:[%s433_s1 + $0x18] sm:$0xff]  ;;  %v31_v1 = vld [vmem:[%s433_s1 + $0x10] sm:$0xff]  ;;  %v27_v2 = vld [vmem:[%s434_s0] sm:$0xff]  ;;  %26 = vst.msk [vmem:[#allocation2 + $0x8] sm:$0xff] %vm24_vm0, %v316_v22 }
   0x2   :  { %269 = vmatprep.subr.mxu0 %v32_v0  ;;  %v30_v3 = vld [vmem:[%s433_s1 + $0x8] sm:$0xff]  ;;  %277 = vmatprep.mubr.msk.f32.mxu0 %vm24_vm0, %v27_v2  ;;  %v141_v4 = vld [vmem:[%s435_s3 + $0x78] sm:$0xff]  ;;  %v140_v5 = vld [vmem:[%s435_s3 + $0x70] sm:$0xff]  ;;  %25 = vst.msk [vmem:[#allocation2] sm:$0xff] %vm24_vm0, %v316_v22 }
   0x3   :  { %270 = vmatpush3.msra.mxu0 %v32_v0  ;;  %280 = vmatprep.subr.mxu1 %v141_v4  ;;  %v29_v6 = vld [vmem:[%s433_s1] sm:$0xff]  ;;  %v139_v7 = vld [vmem:[%s435_s3 + $0x68] sm:$0xff]  ;;  %v137_v10 = vld [vmem:[%s435_s3 + $0x58] sm:$0xff] }
   0x4   :  { %271 = vmatprep.subr.mxu0 %v31_v1  ;;  %281 = vmatpush3.msra.mxu1 %v141_v4  ;;  %v28_v8 = vld [vmem:[%s434_s0 + $0x8] sm:$0xff]  ;;  %v138_v9 = vld [vmem:[%s435_s3 + $0x60] sm:$0xff]  ;;  %v136_v11 = vld [vmem:[%s435_s3 + $0x50] sm:$0xff] }
   0x5   :  { %272 = vmatpush3.msra.mxu0 %v31_v1  ;;  %282 = vmatprep.subr.mxu1 %v140_v5  ;;  %v135_v12 = vld [vmem:[%s435_s3 + $0x48] sm:$0xff]  ;;  %v134_v13 = vld [vmem:[%s435_s3 + $0x40] sm:$0xff]  ;;  %v133_v14 = vld [vmem:[%s435_s3 + $0x38] sm:$0xff] }
   0x6   :  { %273 = vmatprep.subr.mxu0 %v30_v3  ;;  %283 = vmatpush3.msra.mxu1 %v140_v5  ;;  %v132_v15 = vld [vmem:[%s435_s3 + $0x30] sm:$0xff]  ;;  %v131_v16 = vld [vmem:[%s435_s3 + $0x28] sm:$0xff]  ;;  %v130_v17 = vld [vmem:[%s435_s3 + $0x20] sm:$0xff] }
   0x7   :  { %274 = vmatpush3.msra.mxu0 %v30_v3  ;;  %284 = vmatprep.subr.mxu1 %v139_v7  ;;  %v129_v18 = vld [vmem:[%s435_s3 + $0x18] sm:$0xff]  ;;  %v128_v19 = vld [vmem:[%s435_s3 + $0x10] sm:$0xff]  ;;  %v127_v20 = vld [vmem:[%s435_s3 + $0x8] sm:$0xff] }
   0x8   :  { %275 = vmatprep.subr.mxu0 %v29_v6  ;;  %285 = vmatpush3.msra.mxu1 %v139_v7  ;;  %v126_v21 = vld [vmem:[%s435_s3] sm:$0xff]  ;;  %v125_v30 = vld [vmem:[#allocation2 + $0x8] sm:$0xff] }
   0x9   :  { %276 = vmatpush3.msra.mxu0 %v29_v6  ;;  %286 = vmatprep.subr.mxu1 %v138_v9  ;;  %v241_v23 = vld [vmem:[%s436_s2] ss:$0 sm:$0xff] }
   0xa   :  { %278 = vmatmul.mubr.msk.f32.vlgmr.msra.gmra.mxu0 %vm24_vm0, %v28_v8  ;;  %287 = vmatpush3.msra.mxu1 %v138_v9  ;;  %v124_v32 = vld [vmem:[#allocation2] sm:$0xff] }
   0xb   :  { %288 = vmatprep.subr.mxu1 %v137_v10  ;;  %v244_v36 = vld [vmem:[%s437_s4] ss:$0 sm:$0xff] }
   0xc   :  { %289 = vmatpush3.msra.mxu1 %v137_v10 }
   0xd   :  { %290 = vmatprep.subr.mxu1 %v136_v11 }
   0xe   :  { %291 = vmatpush3.msra.mxu1 %v136_v11 }
   0xf   :  { %292 = vmatprep.subr.mxu1 %v135_v12 }
  0x10   :  { %293 = vmatpush3.msra.mxu1 %v135_v12 }
  0x11   :  { %294 = vmatprep.subr.mxu1 %v134_v13 }
  0x12   :  { %295 = vmatpush3.msra.mxu1 %v134_v13 }
  0x13   :  { %296 = vmatprep.subr.mxu1 %v133_v14 }
  0x14   :  { %297 = vmatpush3.msra.mxu1 %v133_v14 }
  0x15   :  { %298 = vmatprep.subr.mxu1 %v132_v15 }
  0x16   :  { %299 = vmatpush3.msra.mxu1 %v132_v15 }
  0x17   :  { %300 = vmatprep.subr.mxu1 %v131_v16 }
  0x18   :  { %301 = vmatpush3.msra.mxu1 %v131_v16 }
  0x19   :  { %302 = vmatprep.subr.mxu1 %v130_v17 }
  0x1a   :  { %303 = vmatpush3.msra.mxu1 %v130_v17 }
  0x1b   :  { %304 = vmatprep.subr.mxu1 %v129_v18 }
  0x1c   :  { %305 = vmatpush3.msra.mxu1 %v129_v18 }
  0x1d   :  { %306 = vmatprep.subr.mxu1 %v128_v19 }
  0x1e   :  { %307 = vmatpush3.msra.mxu1 %v128_v19 }
  0x1f   :  { %308 = vmatprep.subr.mxu1 %v127_v20 }
  0x20   :  { %309 = vmatpush3.msra.mxu1 %v127_v20 }
  0x21   :  { %310 = vmatprep.subr.mxu1 %v126_v21 }
  0x22   :  { %311 = vmatpush3.msra.mxu1 %v126_v21 }
  0xca   :  { %v279_v24 = vpop.f32.mrf.mxu0 }
  0xcb   :  { %v119_v25 = vadd.f32 %v279_v24, %v241_v23 }
  0xcc   :  { %v113_v26 = vpop.f32.mrf.mxu0 }
  0xcd   :  { %v114_v27 = vadd.f32 %v241_v23, %v113_v26  ;;  %v123_v29 = vmax.f32 %v119_v25, 0.0 }
  0xcf   :  { %v122_v28 = vmax.f32 %v114_v27, 0.0 }
  0xd1   :  { %312 = vmatprep.mubr.f32.mxu1 %v122_v28 }
  0xd2   :  { %313 = vmatmul.mubr.f32.vlgmr.msra.gmra.mxu1 %v123_v29 }
 0x192   :  { %v314_v31 = vpop.f32.mrf.mxu1 }
 0x193   :  { %v218_v33 = vadd.f32 %v314_v31, %v125_v30 }
 0x194   :  { %v208_v34 = vpop.f32.mrf.mxu1 }
 0x195   :  { %220 = vst.msk [vmem:[#allocation2 + $0x8] sm:$0xff] %vm24_vm0, %v218_v33  ;;  %v217_v35 = vadd.f32 %v208_v34, %v124_v32 }
 0x197   :  { %219 = vst.msk [vmem:[#allocation2] sm:$0xff] %vm24_vm0, %v217_v35 }
 0x19c   :  { %v225_v37 = vld [vmem:[#allocation2 + $0x8] sm:$0xff] }
 0x19d   :  { %v234_v38 = vadd.f32 %v244_v36, %v225_v37 }
 0x19e   :  { %v224_v39 = vld [vmem:[#allocation2] sm:$0xff] }
 0x19f   :  { %236 = vst.msk [vmem:[%s438_s5 + $0x8] sm:$0xff] %vm24_vm0, %v234_v38  ;;  %v233_v40 = vadd.f32 %v244_v36, %v224_v39 }
 0x1a1   :  { %235 = vst.msk [vmem:[%s438_s5] sm:$0xff] %vm24_vm0, %v233_v40 }

</bundles_post_ra>
